<compile_context>
chip_gen: v5e
topology: v5e:2x2
jax: 0.10.0
libtpu: 0.0.40
codegen_flags: <defaults>
</compile_context>

<pallas_src>
import functools

import jax
import jax.numpy as jnp
from jax.experimental import pallas as pl
from jax.experimental.pallas import tpu as pltpu

EPS = 1e-5


# ------------------------------ Pallas kernels ------------------------------

def _layer_norm(z, alpha, bias):
    """Torch-style LN: unbiased std, eps added to std, scalar affine."""
    d = z.shape[-1]
    mean = jnp.mean(z, axis=-1, keepdims=True)
    var = jnp.sum((z - mean) ** 2, axis=-1, keepdims=True) / (d - 1)
    inv = pl.reciprocal(jnp.sqrt(var) + EPS, approx=True)
    return alpha * ((z - mean) * inv) + bias


def _mha_block_kernel(xq_ref, xkv_ref,
                      wq_ref, bq_ref, wk_ref, bk_ref, wv_ref, bv_ref,
                      wo_ref, bo_ref, alpha_ref, bias_ref,
                      o_ref, *, heads):
    """One batch element: LN(xq + OutProj(Attention(Q(xq), K(xkv), V(xkv))))."""
    xq = xq_ref[0]          # (Sq, D)  f32
    xkv = xkv_ref[0]        # (Sk, D)  f32
    sq, d = xq.shape
    dk = d // heads
    scale = 1.0 / (dk ** 0.5)

    xq_b = xq.astype(jnp.bfloat16)
    xkv_b = xkv.astype(jnp.bfloat16)

    # Fused projections (bf16 MXU, f32 accumulate), stay in VMEM.
    q = jnp.dot(xq_b, wq_ref[...], preferred_element_type=jnp.float32) + bq_ref[...]
    k = jnp.dot(xkv_b, wk_ref[...], preferred_element_type=jnp.float32) + bk_ref[...]
    v = jnp.dot(xkv_b, wv_ref[...], preferred_element_type=jnp.float32) + bv_ref[...]
    wo = wo_ref[...]        # (D, D) bf16

    # Per-head attention with the output projection folded into the head loop:
    # concat_h(attn_h) @ Wo == sum_h attn_h @ Wo[h*dk:(h+1)*dk, :].
    # TODO(synk): for production D, batch heads into one wide MXU matmul.
    acc = jnp.zeros((sq, d), jnp.float32)
    for h in range(heads):
        lo = h * dk
        qh = (q[:, lo:lo + dk] * scale).astype(jnp.bfloat16)   # (Sq, dk)
        kh = k[:, lo:lo + dk].astype(jnp.bfloat16)             # (Sk, dk)
        vh = v[:, lo:lo + dk].astype(jnp.bfloat16)             # (Sk, dk)

        s = jax.lax.dot_general(qh, kh, (((1,), (1,)), ((), ())),
                                preferred_element_type=jnp.float32)  # (Sq, Sk)
        s = s - jnp.max(s, axis=-1, keepdims=True)
        p = jnp.exp(s)
        p = p * pl.reciprocal(jnp.sum(p, axis=-1, keepdims=True), approx=True)

        ah = jnp.dot(p.astype(jnp.bfloat16), vh,
                     preferred_element_type=jnp.float32)             # (Sq, dk)
        acc = acc + jnp.dot(ah.astype(jnp.bfloat16), wo[lo:lo + dk, :],
                            preferred_element_type=jnp.float32)      # (Sq, D)

    # Residual + LayerNorm fused into the epilogue.
    z = xq + acc + bo_ref[...]
    o_ref[0] = _layer_norm(z, alpha_ref[0, 0], bias_ref[0, 0])


def _ffn_block_kernel(x_ref, w1_ref, b1_ref, w2_ref, b2_ref,
                      alpha_ref, bias_ref, o_ref):
    """One row tile: LN(x + W2 @ gelu(W1 @ x))."""
    x = x_ref[...]                                               # (bm, D) f32
    h = jnp.dot(x.astype(jnp.bfloat16), w1_ref[...],
                preferred_element_type=jnp.float32) + b1_ref[...]
    h = jax.nn.gelu(h, approximate=False)     # F.gelu default = exact (erf)
    y = jnp.dot(h.astype(jnp.bfloat16), w2_ref[...],
                preferred_element_type=jnp.float32) + b2_ref[...]
    z = x + y
    o_ref[...] = _layer_norm(z, alpha_ref[0, 0], bias_ref[0, 0])


# -------------------------------- wrappers ----------------------------------

def mha_block(xq, xkv, p, alpha, bias, heads):
    """LN(xq + MultiHeadAttention(xq, xkv, xkv)); one grid step per batch."""
    b, sq, d = xq.shape
    sk = xkv.shape[1]
    assert d % heads == 0

    kernel = functools.partial(_mha_block_kernel, heads=heads)
    full2d = lambda i: (0, 0)
    return pl.pallas_call(
        kernel,
        grid=(b,),
        out_shape=jax.ShapeDtypeStruct((b, sq, d), jnp.float32),
        in_specs=[
            pl.BlockSpec((1, sq, d), lambda i: (i, 0, 0)),   # xq
            pl.BlockSpec((1, sk, d), lambda i: (i, 0, 0)),   # xkv
            pl.BlockSpec((d, d), full2d),                    # Wq (bf16, (in,out))
            pl.BlockSpec((1, d), full2d),                    # bq
            pl.BlockSpec((d, d), full2d),                    # Wk
            pl.BlockSpec((1, d), full2d),                    # bk
            pl.BlockSpec((d, d), full2d),                    # Wv
            pl.BlockSpec((1, d), full2d),                    # bv
            pl.BlockSpec((d, d), full2d),                    # Wo
            pl.BlockSpec((1, d), full2d),                    # bo
            pl.BlockSpec(memory_space=pltpu.MemorySpace.SMEM),  # ln alpha (1,1)
            pl.BlockSpec(memory_space=pltpu.MemorySpace.SMEM),  # ln bias  (1,1)
        ],
        out_specs=pl.BlockSpec((1, sq, d), lambda i: (i, 0, 0)),
        compiler_params=pltpu.CompilerParams(dimension_semantics=("parallel",)),
    )(xq, xkv, p["wq"], p["bq"], p["wk"], p["bk"], p["wv"], p["bv"],
      p["wo"], p["bo"], alpha, bias)


def _row_block(n):
    """Largest power-of-two row tile <= 256 dividing n, preferring >=2 tiles."""
    for bm in (256, 128, 64, 32, 16, 8):
        if n % bm == 0 and n // bm >= 2:
            return bm
    return n


def ffn_block(x2d, p, alpha, bias):
    """LN(x + FFN(x)) on a (N, D) activation slab, tiled over rows."""
    n, d = x2d.shape
    hid = p["w1"].shape[1]
    bm = _row_block(n)
    full2d = lambda i: (0, 0)
    return pl.pallas_call(
        _ffn_block_kernel,
        grid=(n // bm,),
        out_shape=jax.ShapeDtypeStruct((n, d), jnp.float32),
        in_specs=[
            pl.BlockSpec((bm, d), lambda i: (i, 0)),          # x rows
            pl.BlockSpec((d, hid), full2d),                   # W1 (bf16)
            pl.BlockSpec((1, hid), full2d),                   # b1
            pl.BlockSpec((hid, d), full2d),                   # W2 (bf16)
            pl.BlockSpec((1, d), full2d),                     # b2
            pl.BlockSpec(memory_space=pltpu.MemorySpace.SMEM),   # ln alpha
            pl.BlockSpec(memory_space=pltpu.MemorySpace.SMEM),   # ln bias
        ],
        out_specs=pl.BlockSpec((bm, d), lambda i: (i, 0)),
        compiler_params=pltpu.CompilerParams(dimension_semantics=("parallel",)),
    )(x2d, p["w1"], p["b1"], p["w2"], p["b2"], alpha, bias)


def decoder_block(x, enc, prep, heads):
    b, s, d = x.shape
    x = mha_block(x, x, prep["self_attn"], prep["ln1_alpha"], prep["ln1_bias"], heads)
    x = mha_block(x, enc, prep["cross_attn"], prep["ln2_alpha"], prep["ln2_bias"], heads)
    x2d = ffn_block(x.reshape(b * s, d), prep["ffn"],
                    prep["ln3_alpha"], prep["ln3_bias"])
    return x2d.reshape(b, s, d)


# ----------------------- parameter prep (once, off hot path) ----------------

def prepare_params(params):
    """Pre-transpose weights to (in, out), cast matmul weights to bf16, reshape
    biases/LN scalars. Done ONCE outside the per-step hot path."""
    def prep_mha(p):
        return {
            "wq": jnp.asarray(p["wq"].T, jnp.bfloat16),
            "bq": p["bq"].reshape(1, -1).astype(jnp.float32),
            "wk": jnp.asarray(p["wk"].T, jnp.bfloat16),
            "bk": p["bk"].reshape(1, -1).astype(jnp.float32),
            "wv": jnp.asarray(p["wv"].T, jnp.bfloat16),
            "bv": p["bv"].reshape(1, -1).astype(jnp.float32),
            "wo": jnp.asarray(p["wo"].T, jnp.bfloat16),
            "bo": p["bo"].reshape(1, -1).astype(jnp.float32),
        }
    return {
        "self_attn": prep_mha(params["self_attn"]),
        "cross_attn": prep_mha(params["cross_attn"]),
        "ffn": {
            "w1": jnp.asarray(params["ffn_w1"].T, jnp.bfloat16),
            "b1": params["ffn_b1"].reshape(1, -1).astype(jnp.float32),
            "w2": jnp.asarray(params["ffn_w2"].T, jnp.bfloat16),
            "b2": params["ffn_b2"].reshape(1, -1).astype(jnp.float32),
        },
        "ln1_alpha": params["ln1_alpha"].reshape(1, 1).astype(jnp.float32),
        "ln1_bias": params["ln1_bias"].reshape(1, 1).astype(jnp.float32),
        "ln2_alpha": params["ln2_alpha"].reshape(1, 1).astype(jnp.float32),
        "ln2_bias": params["ln2_bias"].reshape(1, 1).astype(jnp.float32),
        "ln3_alpha": params["ln3_alpha"].reshape(1, 1).astype(jnp.float32),
        "ln3_bias": params["ln3_bias"].reshape(1, 1).astype(jnp.float32),
    }


# --------------------------- pure-JAX reference ------------------------------
# Mirrors the kernel's precision choices (bf16 MXU inputs, f32 accumulation,
# f32 softmax/GELU/LayerNorm) so the check is tight; the only non-mirrored
# pieces are the approx reciprocals (tiny).

def _layer_norm_ref(z, alpha, bias):
    d = z.shape[-1]
    mean = jnp.mean(z, axis=-1, keepdims=True)
    var = jnp.sum((z - mean) ** 2, axis=-1, keepdims=True) / (d - 1)
    norm = (z - mean) / (jnp.sqrt(var) + EPS)
    return alpha[0, 0] * norm + bias[0, 0]


def _mha_block_ref(xq, xkv, p, alpha, bias, heads):
    f32 = jnp.float32
    b, sq, d = xq.shape
    dk = d // heads
    scale = 1.0 / (dk ** 0.5)
    xq_b = xq.astype(jnp.bfloat16)
    xkv_b = xkv.astype(jnp.bfloat16)
    q = jnp.dot(xq_b, p["wq"], preferred_element_type=f32) + p["bq"]
    k = jnp.dot(xkv_b, p["wk"], preferred_element_type=f32) + p["bk"]
    v = jnp.dot(xkv_b, p["wv"], preferred_element_type=f32) + p["bv"]
    acc = jnp.zeros((b, sq, d), f32)
    for h in range(heads):
        lo = h * dk
        qh = (q[..., lo:lo + dk] * scale).astype(jnp.bfloat16)
        kh = k[..., lo:lo + dk].astype(jnp.bfloat16)
        vh = v[..., lo:lo + dk].astype(jnp.bfloat16)
        s = jnp.einsum("bqd,bkd->bqk", qh, kh, preferred_element_type=f32)
        s = s - jnp.max(s, axis=-1, keepdims=True)
        pr = jnp.exp(s)
        pr = pr / jnp.sum(pr, axis=-1, keepdims=True)
        ah = jnp.einsum("bqk,bkd->bqd", pr.astype(jnp.bfloat16), vh,
                        preferred_element_type=f32)
        acc = acc + jnp.dot(ah.astype(jnp.bfloat16), p["wo"][lo:lo + dk, :],
                            preferred_element_type=f32)
    z = xq + acc + p["bo"]
    return _layer_norm_ref(z, alpha, bias)


def _ffn_block_ref(x, p, alpha, bias):
    f32 = jnp.float32
    h = jnp.dot(x.astype(jnp.bfloat16), p["w1"], preferred_element_type=f32) + p["b1"]
    h = jax.nn.gelu(h, approximate=False)
    y = jnp.dot(h.astype(jnp.bfloat16), p["w2"], preferred_element_type=f32) + p["b2"]
    return _layer_norm_ref(x + y, alpha, bias)


def decoder_block_ref(x, enc, prep, heads):
    x = _mha_block_ref(x, x, prep["self_attn"],
                       prep["ln1_alpha"], prep["ln1_bias"], heads)
    x = _mha_block_ref(x, enc, prep["cross_attn"],
                       prep["ln2_alpha"], prep["ln2_bias"], heads)
    x = _ffn_block_ref(x, prep["ffn"], prep["ln3_alpha"], prep["ln3_bias"])
    return x


# --------------------------------- params ------------------------------------

def _xavier_uniform(key, shape):
    fan_out, fan_in = shape
    limit = (6.0 / (fan_in + fan_out)) ** 0.5
    return jax.random.uniform(key, shape, jnp.float32, -limit, limit)


def init_params(key, d_model, heads, hidden):
    ks = jax.random.split(key, 16)

    def mha_params(k4):
        kq, kk, kv, ko = jax.random.split(k4, 4)
        return {
            "wq": _xavier_uniform(kq, (d_model, d_model)),
            "bq": jnp.zeros((d_model,), jnp.float32),
            "wk": _xavier_uniform(kk, (d_model, d_model)),
            "bk": jnp.zeros((d_model,), jnp.float32),
            "wv": _xavier_uniform(kv, (d_model, d_model)),
            "bv": jnp.zeros((d_model,), jnp.float32),
            "wo": _xavier_uniform(ko, (d_model, d_model)),
            "bo": jnp.zeros((d_model,), jnp.float32),
        }

    return {
        "self_attn": mha_params(ks[0]),
        "cross_attn": mha_params(ks[1]),
        "ffn_w1": 0.05 * jax.random.normal(ks[2], (hidden, d_model), jnp.float32),
        "ffn_b1": 0.01 * jax.random.normal(ks[3], (hidden,), jnp.float32),
        "ffn_w2": 0.05 * jax.random.normal(ks[4], (d_model, hidden), jnp.float32),
        "ffn_b2": 0.01 * jax.random.normal(ks[5], (d_model,), jnp.float32),
        "ln1_alpha": jnp.ones((1,), jnp.float32),
        "ln1_bias": jnp.zeros((1,), jnp.float32),
        "ln2_alpha": jnp.ones((1,), jnp.float32),
        "ln2_bias": jnp.zeros((1,), jnp.float32),
        "ln3_alpha": jnp.ones((1,), jnp.float32),
        "ln3_bias": jnp.zeros((1,), jnp.float32),
    }


# ----------------------------------- main -------------------------------------

if __name__ == "__main__":
    B, S, S_ENC, D, HEADS, HIDDEN = 2, 8, 8, 32, 4, 64

    key = jax.random.PRNGKey(0)
    k_x, k_enc, k_p = jax.random.split(key, 3)
    x = jax.random.normal(k_x, (B, S, D), jnp.float32)
    enc = jax.random.normal(k_enc, (B, S_ENC, D), jnp.float32)
    params = init_params(k_p, D, HEADS, HIDDEN)
    prep = prepare_params(params)

    out = decoder_block(x, enc, prep, HEADS)
    out = jax.block_until_ready(out)

    ref = decoder_block_ref(x, enc, prep, HEADS)
    assert out.shape == (B, S, D)
    max_err = float(jnp.max(jnp.abs(out - ref)))
    assert jnp.allclose(out, ref, atol=2e-2, rtol=2e-2), max_err

    print("KERNEL_OK")
</pallas_src>

<mosaic_0001>
module attributes {stable_mosaic.version = 11 : i64} {
  func.func @_mha_block_kernel(%arg0: i32, %arg1: memref<1x8x32xf32, #tpu.memory_space<vmem>>, %arg2: memref<1x8x32xf32, #tpu.memory_space<vmem>>, %arg3: memref<32x32xbf16, #tpu.memory_space<vmem>>, %arg4: memref<1x32xf32, #tpu.memory_space<vmem>>, %arg5: memref<32x32xbf16, #tpu.memory_space<vmem>>, %arg6: memref<1x32xf32, #tpu.memory_space<vmem>>, %arg7: memref<32x32xbf16, #tpu.memory_space<vmem>>, %arg8: memref<1x32xf32, #tpu.memory_space<vmem>>, %arg9: memref<32x32xbf16, #tpu.memory_space<vmem>>, %arg10: memref<1x32xf32, #tpu.memory_space<vmem>>, %arg11: memref<1x1xf32, #tpu.memory_space<smem>>, %arg12: memref<1x1xf32, #tpu.memory_space<smem>>, %arg13: memref<1x8x32xf32, #tpu.memory_space<vmem>>) attributes {dimension_semantics = [#tpu.dimension_semantics<parallel>], iteration_bounds = array<i64: 2>, scalar_prefetch = 0 : i64, scratch_operands = 0 : i64, tpu.core_type = #tpu.core_type<tc>, window_params = [{transform_indices = @transform_0, window_bounds = array<i64: 1, 8, 32>}, {transform_indices = @transform_1, window_bounds = array<i64: 1, 8, 32>}, {pipeline_mode = #tpu.pipeline_mode<synchronous>, transform_indices = @transform_2, window_bounds = array<i64: 32, 32>}, {pipeline_mode = #tpu.pipeline_mode<synchronous>, transform_indices = @transform_3, window_bounds = array<i64: 1, 32>}, {pipeline_mode = #tpu.pipeline_mode<synchronous>, transform_indices = @transform_4, window_bounds = array<i64: 32, 32>}, {pipeline_mode = #tpu.pipeline_mode<synchronous>, transform_indices = @transform_5, window_bounds = array<i64: 1, 32>}, {pipeline_mode = #tpu.pipeline_mode<synchronous>, transform_indices = @transform_6, window_bounds = array<i64: 32, 32>}, {pipeline_mode = #tpu.pipeline_mode<synchronous>, transform_indices = @transform_7, window_bounds = array<i64: 1, 32>}, {pipeline_mode = #tpu.pipeline_mode<synchronous>, transform_indices = @transform_8, window_bounds = array<i64: 32, 32>}, {pipeline_mode = #tpu.pipeline_mode<synchronous>, transform_indices = @transform_9, window_bounds = array<i64: 1, 32>}, {transform_indices = @transform_10, window_bounds = array<i64: 1, 1>}, {transform_indices = @transform_11, window_bounds = array<i64: 1, 1>}, {transform_indices = @transform_12, window_bounds = array<i64: 1, 8, 32>}]} {
    %c0 = arith.constant 0 : index
    %c0_0 = arith.constant 0 : index
    %c0_1 = arith.constant 0 : index
    %0 = vector.load %arg1[%c0, %c0_0, %c0_1] : memref<1x8x32xf32, #tpu.memory_space<vmem>>, vector<1x8x32xf32>
    %1 = vector.shape_cast %0 : vector<1x8x32xf32> to vector<8x32xf32>
    %c0_2 = arith.constant 0 : index
    %c0_3 = arith.constant 0 : index
    %c0_4 = arith.constant 0 : index
    %2 = vector.load %arg2[%c0_2, %c0_3, %c0_4] : memref<1x8x32xf32, #tpu.memory_space<vmem>>, vector<1x8x32xf32>
    %3 = vector.shape_cast %2 : vector<1x8x32xf32> to vector<8x32xf32>
    %4 = arith.truncf %1 : vector<8x32xf32> to vector<8x32xbf16>
    %5 = arith.truncf %3 : vector<8x32xf32> to vector<8x32xbf16>
    %c0_5 = arith.constant 0 : index
    %c0_6 = arith.constant 0 : index
    %6 = vector.load %arg3[%c0_5, %c0_6] : memref<32x32xbf16, #tpu.memory_space<vmem>>, vector<32x32xbf16>
    %cst = arith.constant dense<0.000000e+00> : vector<8x32xf32>
    %7 = tpu.matmul %4, %6, %cst {dimension_numbers = #tpu.dot_dimension_numbers<[1], [0], [0], [1], [0, 0, 1, 1], [], []>} : vector<8x32xbf16>, vector<32x32xbf16>, vector<8x32xf32> -> vector<8x32xf32>
    %c0_7 = arith.constant 0 : index
    %c0_8 = arith.constant 0 : index
    %8 = vector.load %arg4[%c0_7, %c0_8] : memref<1x32xf32, #tpu.memory_space<vmem>>, vector<1x32xf32>
    %9 = vector.broadcast %8 : vector<1x32xf32> to vector<8x32xf32>
    %10 = arith.addf %7, %9 : vector<8x32xf32>
    %c0_9 = arith.constant 0 : index
    %c0_10 = arith.constant 0 : index
    %11 = vector.load %arg5[%c0_9, %c0_10] : memref<32x32xbf16, #tpu.memory_space<vmem>>, vector<32x32xbf16>
    %cst_11 = arith.constant dense<0.000000e+00> : vector<8x32xf32>
    %12 = tpu.matmul %5, %11, %cst_11 {dimension_numbers = #tpu.dot_dimension_numbers<[1], [0], [0], [1], [0, 0, 1, 1], [], []>} : vector<8x32xbf16>, vector<32x32xbf16>, vector<8x32xf32> -> vector<8x32xf32>
    %c0_12 = arith.constant 0 : index
    %c0_13 = arith.constant 0 : index
    %13 = vector.load %arg6[%c0_12, %c0_13] : memref<1x32xf32, #tpu.memory_space<vmem>>, vector<1x32xf32>
    %14 = vector.broadcast %13 : vector<1x32xf32> to vector<8x32xf32>
    %15 = arith.addf %12, %14 : vector<8x32xf32>
    %c0_14 = arith.constant 0 : index
    %c0_15 = arith.constant 0 : index
    %16 = vector.load %arg7[%c0_14, %c0_15] : memref<32x32xbf16, #tpu.memory_space<vmem>>, vector<32x32xbf16>
    %cst_16 = arith.constant dense<0.000000e+00> : vector<8x32xf32>
    %17 = tpu.matmul %5, %16, %cst_16 {dimension_numbers = #tpu.dot_dimension_numbers<[1], [0], [0], [1], [0, 0, 1, 1], [], []>} : vector<8x32xbf16>, vector<32x32xbf16>, vector<8x32xf32> -> vector<8x32xf32>
    %c0_17 = arith.constant 0 : index
    %c0_18 = arith.constant 0 : index
    %18 = vector.load %arg8[%c0_17, %c0_18] : memref<1x32xf32, #tpu.memory_space<vmem>>, vector<1x32xf32>
    %19 = vector.broadcast %18 : vector<1x32xf32> to vector<8x32xf32>
    %20 = arith.addf %17, %19 : vector<8x32xf32>
    %c0_19 = arith.constant 0 : index
    %c0_20 = arith.constant 0 : index
    %21 = vector.load %arg9[%c0_19, %c0_20] : memref<32x32xbf16, #tpu.memory_space<vmem>>, vector<32x32xbf16>
    %cst_21 = arith.constant 0.000000e+00 : f32
    %22 = vector.broadcast %cst_21 : f32 to vector<8x32xf32>
    %23 = vector.extract_strided_slice %10 {offsets = [0, 0], sizes = [8, 8], strides = [1, 1]} : vector<8x32xf32> to vector<8x8xf32>
    %cst_22 = arith.constant 0.353553385 : f32
    %24 = vector.broadcast %cst_22 : f32 to vector<8x8xf32>
    %25 = arith.mulf %23, %24 : vector<8x8xf32>
    %26 = arith.truncf %25 : vector<8x8xf32> to vector<8x8xbf16>
    %27 = vector.extract_strided_slice %15 {offsets = [0, 0], sizes = [8, 8], strides = [1, 1]} : vector<8x32xf32> to vector<8x8xf32>
    %28 = arith.truncf %27 : vector<8x8xf32> to vector<8x8xbf16>
    %29 = vector.extract_strided_slice %20 {offsets = [0, 0], sizes = [8, 8], strides = [1, 1]} : vector<8x32xf32> to vector<8x8xf32>
    %30 = arith.truncf %29 : vector<8x8xf32> to vector<8x8xbf16>
    %cst_23 = arith.constant dense<0.000000e+00> : vector<8x8xf32>
    %31 = tpu.matmul %26, %28, %cst_23 {dimension_numbers = #tpu.dot_dimension_numbers<[1], [1], [0], [0], [0, 0, 1, 0], [], []>} : vector<8x8xbf16>, vector<8x8xbf16>, vector<8x8xf32> -> vector<8x8xf32>
    %cst_24 = arith.constant dense<0xFF800000> : vector<8xf32>
    %32 = vector.multi_reduction <maximumf>, %31, %cst_24 [1] : vector<8x8xf32> to vector<8xf32>
    %33 = vector.shape_cast %32 : vector<8xf32> to vector<8x1xf32>
    %34 = vector.broadcast %33 : vector<8x1xf32> to vector<8x8xf32>
    %35 = arith.subf %31, %34 : vector<8x8xf32>
    %36 = math.exp %35 : vector<8x8xf32>
    %cst_25 = arith.constant dense<0.000000e+00> : vector<8xf32>
    %37 = vector.multi_reduction <add>, %36, %cst_25 [1] : vector<8x8xf32> to vector<8xf32>
    %38 = vector.shape_cast %37 : vector<8xf32> to vector<8x1xf32>
    %39 = tpu.reciprocal %38 {approx = true} : vector<8x1xf32> -> vector<8x1xf32>
    %40 = vector.broadcast %39 : vector<8x1xf32> to vector<8x8xf32>
    %41 = arith.mulf %36, %40 : vector<8x8xf32>
    %42 = arith.truncf %41 : vector<8x8xf32> to vector<8x8xbf16>
    %cst_26 = arith.constant dense<0.000000e+00> : vector<8x8xf32>
    %43 = tpu.matmul %42, %30, %cst_26 {dimension_numbers = #tpu.dot_dimension_numbers<[1], [0], [0], [1], [0, 0, 1, 1], [], []>} : vector<8x8xbf16>, vector<8x8xbf16>, vector<8x8xf32> -> vector<8x8xf32>
    %44 = arith.truncf %43 : vector<8x8xf32> to vector<8x8xbf16>
    %45 = vector.extract_strided_slice %21 {offsets = [0, 0], sizes = [8, 32], strides = [1, 1]} : vector<32x32xbf16> to vector<8x32xbf16>
    %cst_27 = arith.constant dense<0.000000e+00> : vector<8x32xf32>
    %46 = tpu.matmul %44, %45, %cst_27 {dimension_numbers = #tpu.dot_dimension_numbers<[1], [0], [0], [1], [0, 0, 1, 1], [], []>} : vector<8x8xbf16>, vector<8x32xbf16>, vector<8x32xf32> -> vector<8x32xf32>
    %47 = arith.addf %22, %46 : vector<8x32xf32>
    %48 = vector.extract_strided_slice %10 {offsets = [0, 8], sizes = [8, 8], strides = [1, 1]} : vector<8x32xf32> to vector<8x8xf32>
    %cst_28 = arith.constant 0.353553385 : f32
    %49 = vector.broadcast %cst_28 : f32 to vector<8x8xf32>
    %50 = arith.mulf %48, %49 : vector<8x8xf32>
    %51 = arith.truncf %50 : vector<8x8xf32> to vector<8x8xbf16>
    %52 = vector.extract_strided_slice %15 {offsets = [0, 8], sizes = [8, 8], strides = [1, 1]} : vector<8x32xf32> to vector<8x8xf32>
    %53 = arith.truncf %52 : vector<8x8xf32> to vector<8x8xbf16>
    %54 = vector.extract_strided_slice %20 {offsets = [0, 8], sizes = [8, 8], strides = [1, 1]} : vector<8x32xf32> to vector<8x8xf32>
    %55 = arith.truncf %54 : vector<8x8xf32> to vector<8x8xbf16>
    %cst_29 = arith.constant dense<0.000000e+00> : vector<8x8xf32>
    %56 = tpu.matmul %51, %53, %cst_29 {dimension_numbers = #tpu.dot_dimension_numbers<[1], [1], [0], [0], [0, 0, 1, 0], [], []>} : vector<8x8xbf16>, vector<8x8xbf16>, vector<8x8xf32> -> vector<8x8xf32>
    %cst_30 = arith.constant dense<0xFF800000> : vector<8xf32>
    %57 = vector.multi_reduction <maximumf>, %56, %cst_30 [1] : vector<8x8xf32> to vector<8xf32>
    %58 = vector.shape_cast %57 : vector<8xf32> to vector<8x1xf32>
    %59 = vector.broadcast %58 : vector<8x1xf32> to vector<8x8xf32>
    %60 = arith.subf %56, %59 : vector<8x8xf32>
    %61 = math.exp %60 : vector<8x8xf32>
    %cst_31 = arith.constant dense<0.000000e+00> : vector<8xf32>
    %62 = vector.multi_reduction <add>, %61, %cst_31 [1] : vector<8x8xf32> to vector<8xf32>
    %63 = vector.shape_cast %62 : vector<8xf32> to vector<8x1xf32>
    %64 = tpu.reciprocal %63 {approx = true} : vector<8x1xf32> -> vector<8x1xf32>
    %65 = vector.broadcast %64 : vector<8x1xf32> to vector<8x8xf32>
    %66 = arith.mulf %61, %65 : vector<8x8xf32>
    %67 = arith.truncf %66 : vector<8x8xf32> to vector<8x8xbf16>
    %cst_32 = arith.constant dense<0.000000e+00> : vector<8x8xf32>
    %68 = tpu.matmul %67, %55, %cst_32 {dimension_numbers = #tpu.dot_dimension_numbers<[1], [0], [0], [1], [0, 0, 1, 1], [], []>} : vector<8x8xbf16>, vector<8x8xbf16>, vector<8x8xf32> -> vector<8x8xf32>
    %69 = arith.truncf %68 : vector<8x8xf32> to vector<8x8xbf16>
    %70 = vector.extract_strided_slice %21 {offsets = [8, 0], sizes = [8, 32], strides = [1, 1]} : vector<32x32xbf16> to vector<8x32xbf16>
    %cst_33 = arith.constant dense<0.000000e+00> : vector<8x32xf32>
    %71 = tpu.matmul %69, %70, %cst_33 {dimension_numbers = #tpu.dot_dimension_numbers<[1], [0], [0], [1], [0, 0, 1, 1], [], []>} : vector<8x8xbf16>, vector<8x32xbf16>, vector<8x32xf32> -> vector<8x32xf32>
    %72 = arith.addf %47, %71 : vector<8x32xf32>
    %73 = vector.extract_strided_slice %10 {offsets = [0, 16], sizes = [8, 8], strides = [1, 1]} : vector<8x32xf32> to vector<8x8xf32>
    %cst_34 = arith.constant 0.353553385 : f32
    %74 = vector.broadcast %cst_34 : f32 to vector<8x8xf32>
    %75 = arith.mulf %73, %74 : vector<8x8xf32>
    %76 = arith.truncf %75 : vector<8x8xf32> to vector<8x8xbf16>
    %77 = vector.extract_strided_slice %15 {offsets = [0, 16], sizes = [8, 8], strides = [1, 1]} : vector<8x32xf32> to vector<8x8xf32>
    %78 = arith.truncf %77 : vector<8x8xf32> to vector<8x8xbf16>
    %79 = vector.extract_strided_slice %20 {offsets = [0, 16], sizes = [8, 8], strides = [1, 1]} : vector<8x32xf32> to vector<8x8xf32>
    %80 = arith.truncf %79 : vector<8x8xf32> to vector<8x8xbf16>
    %cst_35 = arith.constant dense<0.000000e+00> : vector<8x8xf32>
    %81 = tpu.matmul %76, %78, %cst_35 {dimension_numbers = #tpu.dot_dimension_numbers<[1], [1], [0], [0], [0, 0, 1, 0], [], []>} : vector<8x8xbf16>, vector<8x8xbf16>, vector<8x8xf32> -> vector<8x8xf32>
    %cst_36 = arith.constant dense<0xFF800000> : vector<8xf32>
    %82 = vector.multi_reduction <maximumf>, %81, %cst_36 [1] : vector<8x8xf32> to vector<8xf32>
    %83 = vector.shape_cast %82 : vector<8xf32> to vector<8x1xf32>
    %84 = vector.broadcast %83 : vector<8x1xf32> to vector<8x8xf32>
    %85 = arith.subf %81, %84 : vector<8x8xf32>
    %86 = math.exp %85 : vector<8x8xf32>
    %cst_37 = arith.constant dense<0.000000e+00> : vector<8xf32>
    %87 = vector.multi_reduction <add>, %86, %cst_37 [1] : vector<8x8xf32> to vector<8xf32>
    %88 = vector.shape_cast %87 : vector<8xf32> to vector<8x1xf32>
    %89 = tpu.reciprocal %88 {approx = true} : vector<8x1xf32> -> vector<8x1xf32>
    %90 = vector.broadcast %89 : vector<8x1xf32> to vector<8x8xf32>
    %91 = arith.mulf %86, %90 : vector<8x8xf32>
    %92 = arith.truncf %91 : vector<8x8xf32> to vector<8x8xbf16>
    %cst_38 = arith.constant dense<0.000000e+00> : vector<8x8xf32>
    %93 = tpu.matmul %92, %80, %cst_38 {dimension_numbers = #tpu.dot_dimension_numbers<[1], [0], [0], [1], [0, 0, 1, 1], [], []>} : vector<8x8xbf16>, vector<8x8xbf16>, vector<8x8xf32> -> vector<8x8xf32>
    %94 = arith.truncf %93 : vector<8x8xf32> to vector<8x8xbf16>
    %95 = vector.extract_strided_slice %21 {offsets = [16, 0], sizes = [8, 32], strides = [1, 1]} : vector<32x32xbf16> to vector<8x32xbf16>
    %cst_39 = arith.constant dense<0.000000e+00> : vector<8x32xf32>
    %96 = tpu.matmul %94, %95, %cst_39 {dimension_numbers = #tpu.dot_dimension_numbers<[1], [0], [0], [1], [0, 0, 1, 1], [], []>} : vector<8x8xbf16>, vector<8x32xbf16>, vector<8x32xf32> -> vector<8x32xf32>
    %97 = arith.addf %72, %96 : vector<8x32xf32>
    %98 = vector.extract_strided_slice %10 {offsets = [0, 24], sizes = [8, 8], strides = [1, 1]} : vector<8x32xf32> to vector<8x8xf32>
    %cst_40 = arith.constant 0.353553385 : f32
    %99 = vector.broadcast %cst_40 : f32 to vector<8x8xf32>
    %100 = arith.mulf %98, %99 : vector<8x8xf32>
    %101 = arith.truncf %100 : vector<8x8xf32> to vector<8x8xbf16>
    %102 = vector.extract_strided_slice %15 {offsets = [0, 24], sizes = [8, 8], strides = [1, 1]} : vector<8x32xf32> to vector<8x8xf32>
    %103 = arith.truncf %102 : vector<8x8xf32> to vector<8x8xbf16>
    %104 = vector.extract_strided_slice %20 {offsets = [0, 24], sizes = [8, 8], strides = [1, 1]} : vector<8x32xf32> to vector<8x8xf32>
    %105 = arith.truncf %104 : vector<8x8xf32> to vector<8x8xbf16>
    %cst_41 = arith.constant dense<0.000000e+00> : vector<8x8xf32>
    %106 = tpu.matmul %101, %103, %cst_41 {dimension_numbers = #tpu.dot_dimension_numbers<[1], [1], [0], [0], [0, 0, 1, 0], [], []>} : vector<8x8xbf16>, vector<8x8xbf16>, vector<8x8xf32> -> vector<8x8xf32>
    %cst_42 = arith.constant dense<0xFF800000> : vector<8xf32>
    %107 = vector.multi_reduction <maximumf>, %106, %cst_42 [1] : vector<8x8xf32> to vector<8xf32>
    %108 = vector.shape_cast %107 : vector<8xf32> to vector<8x1xf32>
    %109 = vector.broadcast %108 : vector<8x1xf32> to vector<8x8xf32>
    %110 = arith.subf %106, %109 : vector<8x8xf32>
    %111 = math.exp %110 : vector<8x8xf32>
    %cst_43 = arith.constant dense<0.000000e+00> : vector<8xf32>
    %112 = vector.multi_reduction <add>, %111, %cst_43 [1] : vector<8x8xf32> to vector<8xf32>
    %113 = vector.shape_cast %112 : vector<8xf32> to vector<8x1xf32>
    %114 = tpu.reciprocal %113 {approx = true} : vector<8x1xf32> -> vector<8x1xf32>
    %115 = vector.broadcast %114 : vector<8x1xf32> to vector<8x8xf32>
    %116 = arith.mulf %111, %115 : vector<8x8xf32>
    %117 = arith.truncf %116 : vector<8x8xf32> to vector<8x8xbf16>
    %cst_44 = arith.constant dense<0.000000e+00> : vector<8x8xf32>
    %118 = tpu.matmul %117, %105, %cst_44 {dimension_numbers = #tpu.dot_dimension_numbers<[1], [0], [0], [1], [0, 0, 1, 1], [], []>} : vector<8x8xbf16>, vector<8x8xbf16>, vector<8x8xf32> -> vector<8x8xf32>
    %119 = arith.truncf %118 : vector<8x8xf32> to vector<8x8xbf16>
    %120 = vector.extract_strided_slice %21 {offsets = [24, 0], sizes = [8, 32], strides = [1, 1]} : vector<32x32xbf16> to vector<8x32xbf16>
    %cst_45 = arith.constant dense<0.000000e+00> : vector<8x32xf32>
    %121 = tpu.matmul %119, %120, %cst_45 {dimension_numbers = #tpu.dot_dimension_numbers<[1], [0], [0], [1], [0, 0, 1, 1], [], []>} : vector<8x8xbf16>, vector<8x32xbf16>, vector<8x32xf32> -> vector<8x32xf32>
    %122 = arith.addf %97, %121 : vector<8x32xf32>
    %123 = arith.addf %1, %122 : vector<8x32xf32>
    %c0_46 = arith.constant 0 : index
    %c0_47 = arith.constant 0 : index
    %124 = vector.load %arg10[%c0_46, %c0_47] : memref<1x32xf32, #tpu.memory_space<vmem>>, vector<1x32xf32>
    %125 = vector.broadcast %124 : vector<1x32xf32> to vector<8x32xf32>
    %126 = arith.addf %123, %125 : vector<8x32xf32>
    %c0_48 = arith.constant 0 : index
    %c0_49 = arith.constant 0 : index
    %127 = memref.load %arg11[%c0_48, %c0_49] : memref<1x1xf32, #tpu.memory_space<smem>>
    %c0_50 = arith.constant 0 : index
    %c0_51 = arith.constant 0 : index
    %128 = memref.load %arg12[%c0_50, %c0_51] : memref<1x1xf32, #tpu.memory_space<smem>>
    %cst_52 = arith.constant dense<0.000000e+00> : vector<8xf32>
    %129 = vector.multi_reduction <add>, %126, %cst_52 [1] : vector<8x32xf32> to vector<8xf32>
    %130 = vector.shape_cast %129 : vector<8xf32> to vector<8x1xf32>
    %cst_53 = arith.constant 3.200000e+01 : f32
    %131 = vector.broadcast %cst_53 : f32 to vector<8x1xf32>
    %132 = arith.divf %130, %131 : vector<8x1xf32>
    %133 = vector.broadcast %132 : vector<8x1xf32> to vector<8x32xf32>
    %134 = arith.subf %126, %133 : vector<8x32xf32>
    %135 = arith.mulf %134, %134 : vector<8x32xf32>
    %cst_54 = arith.constant dense<0.000000e+00> : vector<8xf32>
    %136 = vector.multi_reduction <add>, %135, %cst_54 [1] : vector<8x32xf32> to vector<8xf32>
    %137 = vector.shape_cast %136 : vector<8xf32> to vector<8x1xf32>
    %cst_55 = arith.constant 3.100000e+01 : f32
    %138 = vector.broadcast %cst_55 : f32 to vector<8x1xf32>
    %139 = arith.divf %137, %138 : vector<8x1xf32>
    %140 = math.sqrt %139 : vector<8x1xf32>
    %cst_56 = arith.constant 9.99999974E-6 : f32
    %141 = vector.broadcast %cst_56 : f32 to vector<8x1xf32>
    %142 = arith.addf %140, %141 : vector<8x1xf32>
    %143 = tpu.reciprocal %142 {approx = true} : vector<8x1xf32> -> vector<8x1xf32>
    %144 = vector.broadcast %132 : vector<8x1xf32> to vector<8x32xf32>
    %145 = arith.subf %126, %144 : vector<8x32xf32>
    %146 = vector.broadcast %143 : vector<8x1xf32> to vector<8x32xf32>
    %147 = arith.mulf %145, %146 : vector<8x32xf32>
    %148 = vector.broadcast %127 : f32 to vector<8x32xf32>
    %149 = arith.mulf %148, %147 : vector<8x32xf32>
    %150 = vector.broadcast %128 : f32 to vector<8x32xf32>
    %151 = arith.addf %149, %150 : vector<8x32xf32>
    %c0_57 = arith.constant 0 : index
    %c0_58 = arith.constant 0 : index
    %c0_59 = arith.constant 0 : index
    %152 = vector.load %arg13[%c0_57, %c0_58, %c0_59] : memref<1x8x32xf32, #tpu.memory_space<vmem>>, vector<1x8x32xf32>
    %153 = vector.shape_cast %152 : vector<1x8x32xf32> to vector<8x32xf32>
    %154 = vector.shape_cast %151 : vector<8x32xf32> to vector<1x8x32xf32>
    tpu.vector_store %arg13[%c0_57, %c0_58, %c0_59], %154 {strides = array<i32>} : memref<1x8x32xf32, #tpu.memory_space<vmem>>, vector<1x8x32xf32>,
    return
  }
  func.func @transform_0(%arg0: i32) -> (i32, i32, i32) {
    %c0_i32 = arith.constant 0 : i32
    %c0_i32_0 = arith.constant 0 : i32
    %c0_i32_1 = arith.constant 0 : i32
    return %arg0, %c0_i32, %c0_i32_0 : i32, i32, i32
  }
  func.func @transform_1(%arg0: i32) -> (i32, i32, i32) {
    %c0_i32 = arith.constant 0 : i32
    %c0_i32_0 = arith.constant 0 : i32
    %c0_i32_1 = arith.constant 0 : i32
    return %arg0, %c0_i32, %c0_i32_0 : i32, i32, i32
  }
  func.func @transform_2(%arg0: i32) -> (i32, i32) {
    %c0_i32 = arith.constant 0 : i32
    %c0_i32_0 = arith.constant 0 : i32
    %c0_i32_1 = arith.constant 0 : i32
    return %c0_i32, %c0_i32_0 : i32, i32
  }
  func.func @transform_3(%arg0: i32) -> (i32, i32) {
    %c0_i32 = arith.constant 0 : i32
    %c0_i32_0 = arith.constant 0 : i32
    %c0_i32_1 = arith.constant 0 : i32
    return %c0_i32, %c0_i32_0 : i32, i32
  }
  func.func @transform_4(%arg0: i32) -> (i32, i32) {
    %c0_i32 = arith.constant 0 : i32
    %c0_i32_0 = arith.constant 0 : i32
    %c0_i32_1 = arith.constant 0 : i32
    return %c0_i32, %c0_i32_0 : i32, i32
  }
  func.func @transform_5(%arg0: i32) -> (i32, i32) {
    %c0_i32 = arith.constant 0 : i32
    %c0_i32_0 = arith.constant 0 : i32
    %c0_i32_1 = arith.constant 0 : i32
    return %c0_i32, %c0_i32_0 : i32, i32
  }
  func.func @transform_6(%arg0: i32) -> (i32, i32) {
    %c0_i32 = arith.constant 0 : i32
    %c0_i32_0 = arith.constant 0 : i32
    %c0_i32_1 = arith.constant 0 : i32
    return %c0_i32, %c0_i32_0 : i32, i32
  }
  func.func @transform_7(%arg0: i32) -> (i32, i32) {
    %c0_i32 = arith.constant 0 : i32
    %c0_i32_0 = arith.constant 0 : i32
    %c0_i32_1 = arith.constant 0 : i32
    return %c0_i32, %c0_i32_0 : i32, i32
  }
  func.func @transform_8(%arg0: i32) -> (i32, i32) {
    %c0_i32 = arith.constant 0 : i32
    %c0_i32_0 = arith.constant 0 : i32
    %c0_i32_1 = arith.constant 0 : i32
    return %c0_i32, %c0_i32_0 : i32, i32
  }
  func.func @transform_9(%arg0: i32) -> (i32, i32) {
    %c0_i32 = arith.constant 0 : i32
    %c0_i32_0 = arith.constant 0 : i32
    %c0_i32_1 = arith.constant 0 : i32
    return %c0_i32, %c0_i32_0 : i32, i32
  }
  func.func @transform_10(%arg0: i32) -> (i32, i32) {
    %c0_i32 = arith.constant 0 : i32
    %c0_i32_0 = arith.constant 0 : i32
    %c0_i32_1 = arith.constant 0 : i32
    return %c0_i32, %c0_i32_0 : i32, i32
  }
  func.func @transform_11(%arg0: i32) -> (i32, i32) {
    %c0_i32 = arith.constant 0 : i32
    %c0_i32_0 = arith.constant 0 : i32
    %c0_i32_1 = arith.constant 0 : i32
    return %c0_i32, %c0_i32_0 : i32, i32
  }
  func.func @transform_12(%arg0: i32) -> (i32, i32, i32) {
    %c0_i32 = arith.constant 0 : i32
    %c0_i32_0 = arith.constant 0 : i32
    %c0_i32_1 = arith.constant 0 : i32
    return %arg0, %c0_i32, %c0_i32_0 : i32, i32, i32
  }
}

</mosaic_0001>

<bundles_post_ra>
// kernel: tpu_custom_call.1
= control target key start
LH: loop header
LB: loop body
LE: loop exit
PB: predicated region body
PF: predicated region fallthrough
CT: control target
= control target key end

     0   :  { %s1975_s0 = inlined_call_operand.hbm [shape: f32[2,8,32], index: 0, kind: input, shape index: {}]   ;;  %s1976_s1 = inlined_call_operand.hbm [shape: f32[2,8,32], index: 1, kind: input, shape index: {}]   ;;  %s1977_s2 = inlined_call_operand.hbm [shape: bf16[32,32], index: 2, kind: input, shape index: {}]   ;;  %s1978_s3 = inlined_call_operand.vmem [shape: f32[1,32], index: 3, kind: input, shape index: {}]   ;;  %s1979_s4 = inlined_call_operand.hbm [shape: bf16[32,32], index: 4, kind: input, shape index: {}]   ;;  %s1980_s5 = inlined_call_operand.vmem [shape: f32[1,32], index: 5, kind: input, shape index: {}]   ;;  %s1981_s6 = inlined_call_operand.hbm [shape: bf16[32,32], index: 6, kind: input, shape index: {}]   ;;  %s1982_s7 = inlined_call_operand.vmem [shape: f32[1,32], index: 7, kind: input, shape index: {}]   ;;  %s1983_s8 = inlined_call_operand.hbm [shape: bf16[32,32], index: 8, kind: input, shape index: {}]   ;;  %s1984_s9 = inlined_call_operand.vmem [shape: f32[1,32], index: 9, kind: input, shape index: {}]   ;;  %s1985_s10 = inlined_call_operand.<no memory space> [shape: f32[1,1], index: 10, kind: input, shape index: {}]   ;;  %s1986_s11 = inlined_call_operand.<no memory space> [shape: f32[1,1], index: 11, kind: input, shape index: {}]   ;;  %s1987_s12 = inlined_call_operand.hbm [shape: f32[2,8,32], index: 12, kind: output, shape index: {}]  }
   0x1   :  { %1993 = sst [smem:[#allocation27_spill]] %s1977_s2 }
   0x2   :  { %1994 = sst [smem:[#allocation28_spill]] %s1979_s4 }
   0x3   :  { %1995 = sst [smem:[#allocation29_spill]] %s1981_s6 }
   0x4   :  { %1996 = sst [smem:[#allocation30_spill]] %s1983_s8 }
   0x5   :  { %17 = sst [smem:[#allocation2]] %s1985_s10 }
   0x6   :  { %18 = sst [smem:[#allocation3]] %s1986_s11 }
   0x7   :  { %19 = vsyncpa [#allocation5], 0 }
   0x8   :  { %21 = vsyncpa [#allocation5 + $0x1], 0 }
   0x9   :  { %22 = vsyncpa [#allocation8], 0 }
   0xa   :  { %24 = vsyncpa [#allocation8 + $0x1], 0 }
   0xb   :  { %25 = vsyncpa [#allocation11], 0 }
   0xc   :  { %26 = vsyncpa [#allocation14], 0 }
   0xd   :  { %27 = vsyncpa [#allocation6], 0 }
   0xe   :  { %29 = vsyncpa [#allocation6 + $0x1], 0  ;;  %s1702_s25 = smov 0   ;;  %s1704_s26 = smov 0  }
   0xf   :  { %s1706_s27 = smov 0   ;;  %s1708_s28 = smov 0  }
  0x10 LB: > { %1997 = sst [smem:[#allocation22_spill]] %s1614_s27  ;;  %s1726_s30 = sadd.s32 4294967295, %s1618_s28   ;;  %s1618_s28 = sphi %s1708_s28, %s2016_s28   ;;  %s1614_s27 = sphi %s1706_s27, %s2018_s27   ;;  %s1610_s26 = sphi %s1704_s26, %s2020_s26   ;;  %s1606_s25 = sphi %s1702_s25, %s2019_s25  }
  0x11   : > { %1998 = sst [smem:[#allocation23_spill]] %s1618_s28  ;;  %p1162_p0 = scmp.ge.s32.totalorder %s1618_s28, 1 }
  0x12   : > { %s1999_s2 = sld [smem:[#allocation27_spill]]  ;;  %p56_p1 = scmp.eq.s32.totalorder %s1726_s30, 0 }
  0x13   : > { %p328_p2 = scmp.lt.s32.totalorder %s1618_s28, 3  ;;  %s1620_s14 = smov [#allocation9]  }
  0x14   : > { %s341_s15 = sshll.u32 %s1620_s14, 4  ;;  %s2001_s4 = sld [smem:[#allocation28_spill]]  ;;  %s342_s15 = int_to_ptr.vmem [resolvable:$true] %s341_s15 }
  0x15   : > { %p1731_p3 = pnand %p1162_p0, %p328_p2  ;;  %s2003_s6 = sld [smem:[#allocation29_spill]] }
  0x16   : > { %s1621_s23 = smov [#allocation10]   ;;  %s1622_s10 = smov 64  }
  0x17   : > { %p1251_p4 = pneg %p1731_p3  ;;  %s358_s24 = sshll.u32 %s1621_s23, 4  ;;  %s359_s24 = int_to_ptr.vmem [resolvable:$true] %s358_s24 }
  0x18   : > { %s339_s29 = sshll.u32 %s1999_s2, 4  ;;  %s1623_s11 = smov 4   ;;  %s340_s29 = int_to_ptr.hbm [resolvable:$true] %s339_s29 }
  0x19   : > { %p1743_p6 = pnand %p1251_p4, %p56_p1  ;;  %s2004_s8 = sld [smem:[#allocation30_spill]] }
  0x1a   : > { %s356_s18 = sshll.u32 %s2001_s4, 4  ;;  %s1624_s20 = smov [#allocation12]   ;;  %s357_s18 = int_to_ptr.hbm [resolvable:$true] %s356_s18 }
  0x1b   : > { %s373_s22 = sshll.u32 %s2003_s6, 4  ;;  %s375_s21 = sshll.u32 %s1624_s20, 4  ;;  %s374_s22 = int_to_ptr.hbm [resolvable:$true] %s373_s22  ;;  %s376_s21 = int_to_ptr.vmem [resolvable:$true] %s375_s21 }
  0x1c   : > { %1254 = dma.hbm_to_vmem [thread:$0]  (!%p1743_p6), %s340_s29, 256, %s342_s15, [#allocation8], %s1622_s10, %s1622_s10, %s1623_s11  }
  0x1d   : > { %1257 = dma.hbm_to_vmem [thread:$0]  (!%p1743_p6), %s357_s18, 256, %s359_s24, [#allocation11], %s1622_s10, %s1622_s10, %s1623_s11  }
  0x1e   : > { %1260 = dma.hbm_to_vmem [thread:$0]  (!%p1743_p6), %s374_s22, 256, %s376_s21, [#allocation11], %s1622_s10, %s1622_s10, %s1623_s11  }
  0x1f   : > { %s390_s17 = sshll.u32 %s2004_s8, 4  ;;  %s1625_s29 = smov [#allocation13]   ;;  %s391_s17 = int_to_ptr.hbm [resolvable:$true] %s390_s17 }
  0x20   : > { %s392_s15 = sshll.u32 %s1625_s29, 4  ;;  %s1161_s18 = sadd.s32 4294967294, %s1618_s28   ;;  %s393_s15 = int_to_ptr.vmem [resolvable:$true] %s392_s15 }
  0x21   : > { %1263 = dma.hbm_to_vmem [thread:$0]  (!%p1743_p6), %s391_s17, 256, %s393_s15, [#allocation14], %s1622_s10, %s1622_s10, %s1623_s11  }
  0x22   : > { %s1763_s23 = sadd.s32 1, %s1618_s28   ;;  %s42_s14 = sadd.s32 1, %s1614_s27 }
  0x23   : > { %2005 = sst [smem:[#allocation24_spill]] %s1763_s23  ;;  %s39_s24 = ssub.s32 %s1618_s28, %s1763_s23 }
  0x24   : > { %p40_p7 = scmp.eq.s32.totalorder %s39_s24, 0  ;;  %p49_p8 = scmp.ne.s32.totalorder %s1614_s27, %s1610_s26 }
  0x25   : > { %p50_p9 = scmp.eq.s32.totalorder %s1618_s28, 0  ;;  %p55_p10 = scmp.ne.s32.totalorder %s1610_s26, %s1606_s25 }
  0x26   : > { %s1774_s22 = scalar_select %p40_p7, %s1614_s27, %s42_s14  }
  0x27   : > { %p1776_p11 = por %p50_p9, %p49_p8  ;;  %p1782_p12 = por %p56_p1, %p55_p10 }
  0x28   : > { %2006 = sst [smem:[#allocation25_spill]] %s1774_s22  ;;  %p315_p13 = scmp.eq.s32.totalorder %s1726_s30, 1 }
  0x29   : > { %p321_p0 = scmp.eq.s32.totalorder %s1161_s18, 1  ;;  %p1279_p2 = scmp.lt.s32.totalorder %s1618_s28, 2 }
  0x2a   : > { %s415_s10 = sand.u32 1, %s1614_s27   ;;  %p1789_p4 = por %p315_p13, %p49_p8 }
  0x2b   : > { %p1793_p6 = por %p321_p0, %p55_p10  ;;  %s1797_s20 = sshll.u32 %s415_s10, 3 }
  0x2c   : > { %s1169_s21 = sshll.u32 %s1618_s28, 3  ;;  %s419_s14 = scalar_lea.vmem [#allocation4], %s1797_s20 }
  0x2d   : > { %s2010_s17 = scalar_select %p1793_p6, 1, 0 }
  0x2e   : > { %s423_s24 = scalar_lea.hbm %s1975_s0, %s1169_s21  ;;  %s427_s18 = sshll.u32 %s419_s14, 4  ;;  %s428_s18 = int_to_ptr.vmem [resolvable:$true] %s427_s18 }
  0x2f   : > { %2011 = sst [smem:[#allocation26_spill]] %s2010_s17  ;;  %s425_s2 = sshll.u32 %s423_s24, 4  ;;  %s426_s2 = int_to_ptr.hbm [resolvable:$true] %s425_s2 }
  0x30   : > { %p1806_p7 = pnand %p1279_p2, %p1776_p11  ;;  %s442_s22 = scalar_lea.hbm %s1976_s1, %s1169_s21 }
  0x31   : > { %s434_s27 = sand.u32 1, %s1618_s28   ;;  %s416_s23 = scalar_lea.sflag [#allocation5], %s415_s10 }
  0x32   : > { %s1476_s29 = sshra.s32 %s426_s2, 4  ;;  %p1480_p9 = pneg %p1806_p7  ;;  %s1477_s29 = int_to_ptr.hbm [resolvable:$true] %s1476_s29 }
  0x33   : > { %s1478_s15 = scalar_lea.hbm %s1477_s29, 8  ;;  %s1483_s14 = scalar_lea.hbm %s1975_s0, 16 }
  0x34   : > { %p1479_p8 = scmp.ne.s32.totalorder %s1477_s29, %s1478_s15  ;;  %p1484_p13 = scmp.lt.s32.totalorder %s1477_s29, %s1975_s0 }
  0x35   : > { %p1485_p0 = scmp.lt.s32.totalorder %s1483_s14, %s1478_s15 }
  0x36   : > { %p1481_p10 = pnand %p1480_p9, %p1479_p8 }
  0x37   : > { %p1486_p2 = por %p1485_p0, %p1484_p13 }
  0x38   : > { %p1482_p11 = pneg %p1481_p10 }
  0x3a   : > { %p1487_p5 = pnand %p1486_p2, %p1482_p11 }
  0x3c   : > { %1490 = shalt.err (!%p1487_p5)
}
  0x3d   : > { %1267 = dma.hbm_to_vmem [thread:$0]  (!%p1806_p7), %s426_s2, 128, %s428_s18, %s416_s23  }
  0x3e   : > { %s444_s10 = sshll.u32 %s442_s22, 4  ;;  %s438_s21 = scalar_lea.vmem [#allocation7], %s1797_s20  ;;  %s445_s10 = int_to_ptr.hbm [resolvable:$true] %s444_s10 }
  0x3f   : > { %s446_s28 = sshll.u32 %s438_s21, 4  ;;  %s435_s16 = scalar_lea.sflag [#allocation8], %s434_s27  ;;  %s447_s28 = int_to_ptr.vmem [resolvable:$true] %s446_s28 }
  0x40   : > { %s1506_s24 = sshra.s32 %s445_s10, 4  ;;  %s1513_s14 = scalar_lea.hbm %s1976_s1, 16  ;;  %s1507_s24 = int_to_ptr.hbm [resolvable:$true] %s1506_s24 }
  0x41   : > { %s1508_s17 = scalar_lea.hbm %s1507_s24, 8  ;;  %p1514_p5 = scmp.lt.s32.totalorder %s1507_s24, %s1976_s1 }
  0x42   : > { %p1509_p8 = scmp.ne.s32.totalorder %s1507_s24, %s1508_s17  ;;  %p1515_p13 = scmp.lt.s32.totalorder %s1513_s14, %s1508_s17 }
  0x44   : > { %p1511_p10 = pnand %p1509_p8, %p1480_p9  ;;  %p1516_p0 = por %p1515_p13, %p1514_p5 }
  0x46   : > { %p1512_p11 = pneg %p1511_p10 }
  0x48   : > { %p1517_p2 = pnand %p1516_p0, %p1512_p11 }
  0x4a   : > { %1520 = shalt.err (!%p1517_p2)
}
  0x4b   : > { %1270 = dma.hbm_to_vmem [thread:$0]  (!%p1806_p7), %s445_s10, 128, %s447_s28, %s435_s16  }
  0x4c   : > { %455 = sbr.rel (%p1731_p3) target bundleno = 1712 (0x6b0), region = 68  ;;  %s1842_s27 = sand.u32 (!%p1731_p3), 1, %s1610_s26  }
  0x4d   : > { %s1845_s23 = sshll.u32 (!%p1731_p3), %s1842_s27, 3  ;;  %s458_s22 = scalar_lea.sflag (!%p1731_p3), [#allocation5], %s1842_s27 }
  0x4e   : > { %s461_s17 = scalar_lea.vmem (!%p1731_p3), [#allocation4], %s1845_s23 }
  0x51   : > { %1581 = dma.done.wait (%p1782_p12), %s458_s22, 128  }
  0x52   : > { %1583 = vsyncadd (%p1782_p12), %s458_s22, 4294967168  ;;  %s467_s4 = sand.u32 1, %s1726_s30   ;;  %s471_s13 = scalar_lea.vmem [#allocation7], %s1845_s23 }
  0x53   : > { %s468_s28 = scalar_lea.sflag [#allocation8], %s467_s4 }
  0x54   : > { %1585 = dma.done.wait (%p1782_p12), %s468_s28, 128  }
  0x55   : > { %1587 = vsyncadd (%p1782_p12), %s468_s28, 4294967168 }
  0x56   : > { %1589 = dma.done.wait (%p56_p1), [#allocation8], 256  }
  0x57   : > { %1591 = vsyncadd (%p56_p1), [#allocation8], 4294967040 }
  0x58   : > { %1593 = dma.done.wait (%p56_p1), [#allocation11], 512  }
  0x59   : > { %1595 = vsyncadd (%p56_p1), [#allocation11], 4294966784 }
  0x5a   : > { %1597 = dma.done.wait (%p56_p1), [#allocation14], 256  }
  0x5b   : > { %1599 = vsyncadd (%p56_p1), [#allocation14], 4294967040  ;;  %v1224_v0 = vld [vmem:[#allocation9 + $0x8] sm:$0xff]  ;;  %v1226_v1 = vld [vmem:[#allocation10 + $0x8] sm:$0xff]  ;;  %vm563_vm0 = vcmask 261120   ;;  %vm657_vm1 = vcmask 64512  }
  0x5c   : > { %v1223_v2 = vld [vmem:[#allocation9] sm:$0xff]  ;;  %v1225_v3 = vld [vmem:[#allocation10] sm:$0xff]  ;;  %573 = vmatpush.bf16.msra.mxu0 %v1224_v0  ;;  %609 = vmatpush.bf16.msra.mxu1 %v1226_v1  ;;  %s1626_s10 = smov 112   ;;  %s1627_s21 = smov 120   ;;  %v1228_v24 = vld [vmem:[#allocation12 + $0x8] sm:$0xff]  ;;  %vm692_vm2 = vcmask 1043456  }
  0x5d   : > { %v1871_v4 = vld [vmem:[%s461_s17] sm:$0xff]  ;;  %v540_v5 = vld [vmem:[%s471_s13] sm:$0xff]  ;;  %s1628_s16 = smov 104   ;;  %642 = vmatpush.bf16.msra.mxu2 %v1228_v24  ;;  %s968_s6 = sld [smem:[#allocation2]] }
  0x5e   : > { %v541_v6 = vpack.c.bf16 %v1871_v4, %v1871_v4  ;;  %v542_v7 = vpack.c.bf16 %v540_v5, %v540_v5  ;;  %v1328_v8 = vld [vmem:[%s1978_s3] ss:$0 sm:$0xff]  ;;  %v649_v51 = vld [vmem:[#allocation13] sm:$0xf]  ;;  %s969_s2 = sld [smem:[#allocation3]]  ;;  %s1220_s22 = sshll.u32 %s1726_s30, 3 }
  0x5f   : > { %v1329_v9 = vld [vmem:[%s1980_s5] ss:$0 sm:$0xff]  ;;  %v793_v53 = vsel %vm692_vm2, %v649_v51, 0  ;;  %s1025_s28 = scalar_lea.hbm %s1987_s12, %s1220_s22  ;;  %s537_s13 = scalar_lea.vmem [#allocation15], %s1845_s23 }
  0x60   : > { %574 = vmatpush.bf16.msra.mxu0 %v1223_v2  ;;  %610 = vmatpush.bf16.msra.mxu1 %v1225_v3  ;;  %v1227_v25 = vld [vmem:[#allocation12] sm:$0xff]  ;;  %s1027_s19 = sshll.u32 %s537_s13, 4  ;;  %s1029_s20 = sshll.u32 %s1025_s28, 4  ;;  %s1028_s19 = int_to_ptr.vmem [resolvable:$true] %s1027_s19  ;;  %s1030_s20 = int_to_ptr.hbm [resolvable:$true] %s1029_s20 }
  0x61   : > { %643 = vmatpush.bf16.msra.mxu2 %v1227_v25  ;;  %v1330_v43 = vld [vmem:[%s1982_s7] ss:$0 sm:$0xff]  ;;  %s1015_s18 = scalar_lea.sflag [#allocation6], %s1842_s27  ;;  %s1550_s30 = sshra.s32 %s1030_s20, 4  ;;  %s1551_s30 = int_to_ptr.hbm [resolvable:$true] %s1550_s30 }
  0x62   : > { %s1552_s8 = scalar_lea.hbm %s1551_s30, 8  ;;  %s1556_s23 = scalar_lea.hbm %s1987_s12, 16 }
  0x63   : > { %1188 = vmatmul.msk.bf16.vlgmr.msra.gmra.mxu0 %vm563_vm0, %v541_v6  ;;  %1197 = vmatmul.msk.bf16.vlgmr.msra.gmra.mxu1 %vm563_vm0, %v542_v7  ;;  %p1553_p1 = scmp.ne.s32.totalorder %s1551_s30, %s1552_s8  ;;  %p1557_p7 = scmp.lt.s32.totalorder %s1551_s30, %s1987_s12 }
  0x64   : > { %1206 = vmatmul.msk.bf16.vlgmr.msra.gmra.mxu2 %vm563_vm0, %v542_v7  ;;  %p1558_p9 = scmp.lt.s32.totalorder %s1556_s23, %s1552_s8 }
  0x65   : > { %p1554_p3 = pnand %p1553_p1, %p1789_p4 }
  0x66   : > { %p1559_p8 = por %p1558_p9, %p1557_p7 }
  0x67   : > { %p1555_p12 = pneg %p1554_p3 }
  0x69   : > { %p1560_p10 = pnand %p1559_p8, %p1555_p12 }
  0xe0   : > { %v576_v10 = vpop.f32.mrf.mxu0  ;;  %v612_v11 = vpop.f32.mrf.mxu1 }
  0xe1   : > { %v577_v12 = vadd.f32 %v1328_v8, %v576_v10  ;;  %v613_v13 = vadd.f32 %v1329_v9, %v612_v11 }
  0xe3   : > { %v655_v14 = vpack.c.bf16 %v613_v13, %v613_v13  ;;  %v653_v15 = vmul.f32 0.35355338, %v577_v12 }
  0xe5   : > { %810 = vrot.lane.b32.xlu2 %v655_v14, %s1626_s10  ;;  %714 = vrot.lane.b32.xlu1 %v655_v14, %s1627_s21  ;;  %v662_v16 = vsel %vm657_vm1, %v655_v14, 0  ;;  %v654_v19 = vpack.c.bf16 %v653_v15, %v653_v15 }
  0xe6   : > { %671 = vmatpush.bf16.xpose.msra.mxu3 %v662_v16 }
  0xe7   : > { %v645_v42 = vpop.f32.mrf.mxu2 }
  0xe8   : > { %v578_v17 = vpop.f32.mrf.mxu0  ;;  %v614_v18 = vpop.f32.mrf.mxu1  ;;  %v646_v44 = vadd.f32 %v1330_v43, %v645_v42 }
  0xea   : > { %v1903_v46 = vpack.c.bf16 %v646_v44, %v646_v44 }
  0xec   : > { %v694_v47 = vsel %vm692_vm2, %v1903_v46, 0 }
  0xed   : > { %808 = vrot.lane.b32.xlu2 %v654_v19, %s1626_s10  ;;  %711 = vrot.lane.b32.xlu1 %v654_v19, %s1627_s21 }
  0xee   : > { %1207 = vmatmul.msk.bf16.vlgmr.msra.gmra.mxu3 %vm657_vm1, %v654_v19  ;;  %703 = vmatpush.bf16.msrb.mxu0 %v694_v47 }
  0xef   : > { %v647_v45 = vpop.f32.mrf.mxu2 }
  0xf2   : > { %802 = vmatpush.bf16.msra.mxu0 %v793_v53 }
  0xf5   : > { %885 = vrot.lane.b32.xlu1 %v654_v19, %s1628_s16  ;;  %v650_v19 = vld [vmem:[#allocation13 + $0x4] sm:$0xf] }
 0x13f   : > { %v811_v20 = vpop.permute.xlu2 %810 }
 0x140   : > { %v816_v23 = vsel %vm657_vm1, %v811_v20, 0  ;;  %v774_v20 = vsel %vm692_vm2, %v650_v19, 0 }
 0x141   : > { %783 = vmatpush.bf16.msrb.mxu3 %v774_v20 }
 0x147   : > { %v809_v27 = vpop.permute.xlu2 %808 }
 0x157   : > { %v715_v21 = vpop.permute.xlu1 %714 }
 0x158   : > { %v720_v22 = vsel %vm657_vm1, %v715_v21, 0 }
 0x159   : > { %729 = vmatpush.bf16.xpose.msrb.mxu1 %v720_v22  ;;  %v651_v22 = vld [vmem:[#allocation13 + $0x8] sm:$0xf] }
 0x15a   : > { %v869_v24 = vsel %vm692_vm2, %v651_v22, 0 }
 0x15b   : > { %878 = vmatpush.bf16.msra.mxu3 %v869_v24 }
 0x15f   : > { %v712_v26 = vpop.permute.xlu1 %711 }
 0x160   : > { %1209 = vmatmul.msk.bf16.vlgmr.msrb.gmra.mxu1 %vm657_vm1, %v712_v26 }
 0x161   : > { %825 = vmatpush.bf16.xpose.msra.mxu1 %v816_v23 }
 0x167   : > { %v886_v52 = vpop.permute.xlu1 %885 }
 0x170   : > { %1213 = vmatmul.msk.bf16.vlgmr.msra.gmra.mxu1 %vm657_vm1, %v809_v27 }
 0x171   : > { %v673_v28 = vpop.f32.mrf.mxu3 }
 0x172   : > { %v677_v29 = vsel %vm657_vm1, %v673_v28, -inf }
 0x173   : > { %678 = vmax.xlane.f32.xlu0 %v677_v29 }
 0x179   : > { %v675_v30 = vpop.f32.mrf.mxu3 }
 0x1dd   : > { %v731_v31 = vpop.f32.mrf.mxu1 }
 0x1de   : > { %v735_v32 = vsel %vm657_vm1, %v731_v31, -inf }
 0x1df   : > { %736 = vmax.xlane.f32.xlu2 %v735_v32 }
 0x1e5   : > { %v733_v33 = vpop.f32.mrf.mxu1 }
 0x1e6   : > { %v679_v34 = vpop.xlane.xlu0 %678 }
 0x1e7   : > { %v680_v35 = vsub.f32 %v673_v28, %v679_v34 }
 0x1e9   : > { %v681_v36 = vmul.f32 1.442695, %v680_v35 }
 0x1eb   : > { %1332 = vpow2.f32 %v681_v36 }
 0x1ed   : > { %v827_v37 = vpop.f32.mrf.mxu1 }
 0x1ee   : > { %v831_v38 = vsel %vm657_vm1, %v827_v37, -inf }
 0x1ef   : > { %832 = vmax.xlane.f32.xlu1 %v831_v38 }
 0x1f1   : > { %v1333_v39 = vpop.eup %1332 }
 0x1f2   : > { %v683_v40 = vsel %vm657_vm1, %v1333_v39, 0.0 }
 0x1f3   : > { %684 = vadd.xlane.f32.xlu0 %v683_v40 }
 0x1f5   : > { %v829_v41 = vpop.f32.mrf.mxu1 }
 0x207   : > { %887 = vrot.lane.b32.xlu0 %v655_v14, %s1628_s16 }
 0x252   : > { %v737_v48 = vpop.xlane.xlu2 %736 }
 0x253   : > { %v738_v49 = vsub.f32 %v731_v31, %v737_v48 }
 0x255   : > { %v739_v50 = vmul.f32 1.442695, %v738_v49 }
 0x257   : > { %1334 = vpow2.f32 %v739_v50 }
 0x25d   : > { %v1335_v54 = vpop.eup %1334 }
 0x25e   : > { %v741_v55 = vsel %vm657_vm1, %v1335_v54, 0.0 }
 0x25f   : > { %742 = vadd.xlane.f32.xlu2 %v741_v55 }
 0x262   : > { %v833_v56 = vpop.xlane.xlu1 %832 }
 0x263   : > { %v834_v57 = vsub.f32 %v827_v37, %v833_v56 }
 0x265   : > { %v835_v58 = vmul.f32 1.442695, %v834_v57 }
 0x266   : > { %v685_v59 = vpop.xlane.xlu0 %684 }
 0x267   : > { %1336 = vpow2.f32 %v835_v58  ;;  %v1331_v58 = vld [vmem:[%s1984_s9] ss:$0 sm:$0xff] }
 0x268   : > { %1338 = vrcp.f32 %v685_v59 }
 0x26d   : > { %v1337_v60 = vpop.eup %1336 }
 0x26e   : > { %v1339_v61 = vpop.eup %1338  ;;  %v837_v62 = vsel %vm657_vm1, %v1337_v60, 0.0 }
 0x26f   : > { %v687_v63 = vmul.f32 %v1339_v61, %v1333_v39  ;;  %838 = vadd.xlane.f32.xlu1 %v837_v62 }
 0x271   : > { %v688_v0 = vpack.c.bf16 %v687_v63, %v687_v63  ;;  %v1629_v63 = vmov 32.0  }
 0x273   : > { %1208 = vmatmul.msk.bf16.vlgmr.msrb.gmra.mxu0 %vm657_vm1, %v688_v0 }
 0x277   : > { %748 = vrot.lane.b32.xlu2 %v1903_v46, %s1627_s21 }
 0x279   : > { %v888_v1 = vpop.permute.xlu0 %887 }
 0x27a   : > { %v893_v2 = vsel %vm657_vm1, %v888_v1, 0 }
 0x27b   : > { %902 = vmatpush.bf16.xpose.msrb.mxu0 %v893_v2 }
 0x288   : > { %843 = vrot.lane.b32.xlu1 %v1903_v46, %s1626_s10 }
 0x2d2   : > { %v743_v3 = vpop.xlane.xlu2 %742 }
 0x2d3   : > { %1340 = vrcp.f32 %v743_v3 }
 0x2d9   : > { %v1341_v5 = vpop.eup %1340 }
 0x2da   : > { %v745_v6 = vmul.f32 %v1341_v5, %v1335_v54  ;;  %v749_v7 = vpop.permute.xlu2 %748 }
 0x2db   : > { %v754_v8 = vsel %vm692_vm2, %v749_v7, 0 }
 0x2dc   : > { %763 = vmatpush.bf16.msrb.mxu2 %v754_v8  ;;  %v746_v9 = vpack.c.bf16 %v745_v6, %v745_v6 }
 0x2df   : > { %1210 = vmatmul.msk.bf16.vlgmr.msrb.gmra.mxu2 %vm657_vm1, %v746_v9 }
 0x2e2   : > { %v839_v10 = vpop.xlane.xlu1 %838 }
 0x2e3   : > { %1342 = vrcp.f32 %v839_v10 }
 0x2e9   : > { %v1343_v13 = vpop.eup %1342 }
 0x2ea   : > { %v841_v15 = vmul.f32 %v1343_v13, %v1337_v60 }
 0x2ec   : > { %v842_v18 = vpack.c.bf16 %v841_v15, %v841_v15 }
 0x2f0   : > { %v705_v11 = vpop.f32.mrf.mxu0 }
 0x2f1   : > { %v709_v12 = vpack.c.bf16 %v705_v11, %v705_v11  ;;  %v1630_v11 = vmov 31.0  }
 0x2f3   : > { %1212 = vmatmul.msk.bf16.vlgmr.msra.gmra.mxu0 %vm657_vm1, %v709_v12 }
 0x2f8   : > { %v707_v14 = vpop.f32.mrf.mxu0 }
 0x2fa   : > { %v844_v16 = vpop.permute.xlu1 %843 }
 0x2fb   : > { %v849_v17 = vsel %vm692_vm2, %v844_v16, 0 }
 0x2fc   : > { %858 = vmatpush.bf16.msra.mxu2 %v849_v17 }
 0x2ff   : > { %1214 = vmatmul.msk.bf16.vlgmr.msra.gmra.mxu2 %vm657_vm1, %v842_v18 }
 0x303   : > { %1216 = vmatmul.msk.bf16.vlgmr.msrb.gmra.mxu0 %vm657_vm1, %v886_v52  ;;  %v652_v52 = vld [vmem:[#allocation13 + $0xc] sm:$0xf] }
 0x304   : > { %v946_v53 = vsel %vm692_vm2, %v652_v52, 0 }
 0x305   : > { %955 = vmatpush.bf16.msrb.mxu2 %v946_v53 }
 0x362   : > { %v765_v21 = vpop.f32.mrf.mxu2 }
 0x363   : > { %v769_v23 = vpack.c.bf16 %v765_v21, %v765_v21 }
 0x365   : > { %1211 = vmatmul.msk.bf16.vlgmr.msrb.gmra.mxu3 %vm657_vm1, %v769_v23 }
 0x36a   : > { %v767_v25 = vpop.f32.mrf.mxu2 }
 0x370   : > { %v804_v26 = vpop.f32.mrf.mxu0 }
 0x378   : > { %v806_v27 = vpop.f32.mrf.mxu0 }
 0x380   : > { %v904_v28 = vpop.f32.mrf.mxu0 }
 0x381   : > { %v908_v29 = vsel %vm657_vm1, %v904_v28, -inf }
 0x382   : > { %909 = vmax.xlane.f32.xlu0 %v908_v29  ;;  %v860_v30 = vpop.f32.mrf.mxu2 }
 0x383   : > { %v864_v31 = vpack.c.bf16 %v860_v30, %v860_v30 }
 0x385   : > { %1215 = vmatmul.msk.bf16.vlgmr.msra.gmra.mxu3 %vm657_vm1, %v864_v31 }
 0x388   : > { %v906_v32 = vpop.f32.mrf.mxu0 }
 0x389   : > { %v1009_v32 = vstv %s968_s6 }
 0x38a   : > { %v862_v33 = vpop.f32.mrf.mxu2 }
 0x3e8   : > { %v785_v34 = vpop.f32.mrf.mxu3 }
 0x3e9   : > { %v805_v41 = vadd.f32 %v804_v26, %v785_v34  ;;  %v1011_v34 = vstv %s969_s2 }
 0x3f0   : > { %v787_v35 = vpop.f32.mrf.mxu3 }
 0x3f5   : > { %v910_v36 = vpop.xlane.xlu0 %909 }
 0x3f6   : > { %v911_v37 = vsub.f32 %v904_v28, %v910_v36 }
 0x3f8   : > { %v912_v38 = vmul.f32 1.442695, %v911_v37 }
 0x3fa   : > { %1344 = vpow2.f32 %v912_v38 }
 0x400   : > { %v1345_v39 = vpop.eup %1344 }
 0x401   : > { %v914_v40 = vsel %vm657_vm1, %v1345_v39, 0.0 }
 0x402   : > { %915 = vadd.xlane.f32.xlu0 %v914_v40 }
 0x408   : > { %v880_v42 = vpop.f32.mrf.mxu3 }
 0x409   : > { %v884_v43 = vadd.f32 %v880_v42, %v805_v41 }
 0x410   : > { %v882_v44 = vpop.f32.mrf.mxu3 }
 0x416   : > { %920 = vrot.lane.b32.xlu0 %v1903_v46, %s1628_s16 }
 0x475   : > { %v916_v45 = vpop.xlane.xlu0 %915 }
 0x476   : > { %1346 = vrcp.f32 %v916_v45 }
 0x477   : > { %1348 = vrcp.f32 %v1629_v63 }
 0x478   : > { %1350 = vrcp.f32 %v1630_v11 }
 0x47c   : > { %v1347_v47 = vpop.eup %1346 }
 0x47d   : > { %v918_v48 = vmul.f32 %v1347_v47, %v1345_v39  ;;  %v1349_v0 = vpop.eup %1348 }
 0x47e   : > { %v974_v1 = vmul.f32 32.0, %v1349_v0  ;;  %vm978_vm3 = vweird.f32 %v1349_v0  ;;  %v1351_v12 = vpop.eup %1350 }
 0x47f   : > { %v919_v51 = vpack.c.bf16 %v918_v48, %v918_v48  ;;  %v987_v13 = vmul.f32 31.0, %v1351_v12  ;;  %vm991_vm4 = vweird.f32 %v1351_v12 }
 0x480   : > { %v975_v2 = vsub.f32 1.0, %v974_v1 }
 0x481   : > { %v988_v14 = vsub.f32 1.0, %v987_v13 }
 0x482   : > { %v976_v3 = vmul.f32 %v1349_v0, %v975_v2 }
 0x483   : > { %v989_v15 = vmul.f32 %v1351_v12, %v988_v14 }
 0x484   : > { %v977_v5 = vadd.f32 %v1349_v0, %v976_v3 }
 0x485   : > { %v990_v16 = vadd.f32 %v1351_v12, %v989_v15 }
 0x486   : > { %v979_v6 = vsel %vm978_vm3, %v1349_v0, %v977_v5 }
 0x487   : > { %v992_v17 = vsel %vm991_vm4, %v1351_v12, %v990_v16 }
 0x488   : > { %v921_v49 = vpop.permute.xlu0 %920 }
 0x489   : > { %v926_v50 = vsel %vm692_vm2, %v921_v49, 0 }
 0x48a   : > { %935 = vmatpush.bf16.msrb.mxu1 %v926_v50 }
 0x48d   : > { %1217 = vmatmul.msk.bf16.vlgmr.msrb.gmra.mxu1 %vm657_vm1, %v919_v51 }
 0x50a   : > { %v937_v54 = vpop.f32.mrf.mxu1 }
 0x50b   : > { %v941_v55 = vpack.c.bf16 %v937_v54, %v937_v54 }
 0x50d   : > { %1218 = vmatmul.msk.bf16.vlgmr.msrb.gmra.mxu2 %vm657_vm1, %v941_v55 }
 0x512   : > { %v939_v46 = vpop.f32.mrf.mxu1 }
 0x590   : > { %v957_v56 = vpop.f32.mrf.mxu2 }
 0x591   : > { %v961_v57 = vadd.f32 %v957_v56, %v884_v43 }
 0x593   : > { %v962_v59 = vadd.f32 %v961_v57, %v1871_v4 }
 0x595   : > { %v967_v60 = vadd.f32 %v1331_v58, %v962_v59 }
 0x597   : > { %v970_v61 = vsel %vm563_vm0, %v967_v60, 0.0 }
 0x598   : > { %v959_v62 = vpop.f32.mrf.mxu2  ;;  %971 = vadd.xlane.f32.xlu2 %v970_v61 }
 0x60b   : > { %v972_v7 = vpop.xlane.xlu2 %971 }
 0x60c   : > { %v980_v8 = vmul.f32 %v979_v6, %v972_v7 }
 0x60e   : > { %v981_v9 = vsub.f32 %v967_v60, %v980_v8 }
 0x610   : > { %v982_v10 = vmul.f32 %v981_v9, %v981_v9 }
 0x612   : > { %v983_v4 = vsel %vm563_vm0, %v982_v10, 0.0 }
 0x613   : > { %984 = vadd.xlane.f32.xlu1 %v983_v4 }
 0x686   : > { %v985_v18 = vpop.xlane.xlu1 %984 }
 0x687   : > { %v993_v19 = vmul.f32 %v992_v17, %v985_v18 }
 0x689   : > { %1352 = vrsqrt.f32 %v993_v19  ;;  %vm1001_vm5 = vcmp.eq.f32.partialorder %v993_v19, inf  ;;  %v1004_v27 = vand.u32 2147483648, %v993_v19  ;;  %vm1003_vm6 = vcmp.eq.f32.partialorder %v993_v19, 0.0 }
 0x68f   : > { %v1353_v20 = vpop.eup %1352 }
 0x690   : > { %v995_v21 = vmul.f32 %v1353_v20, %v993_v19 }
 0x692   : > { %v996_v22 = vmul.f32 %v1353_v20, %v995_v21 }
 0x694   : > { %v997_v23 = vmul.f32 0.5, %v996_v22 }
 0x696   : > { %v998_v24 = vsub.f32 1.5, %v997_v23 }
 0x698   : > { %v999_v25 = vmul.f32 %v1353_v20, %v998_v24 }
 0x69a   : > { %v1000_v26 = vmul.f32 %v999_v25, %v993_v19 }
 0x69c   : > { %v1002_v28 = vsel %vm1001_vm5, %v993_v19, %v1000_v26 }
 0x69d   : > { %v1005_v29 = vsel %vm1003_vm6, %v1004_v27, %v1002_v28 }
 0x69e   : > { %v1006_v30 = vadd.f32 1e-05, %v1005_v29 }
 0x6a0   : > { %1354 = vrcp.f32 %v1006_v30 }
 0x6a6   : > { %v1355_v31 = vpop.eup %1354 }
 0x6a7   : > { %v1008_v33 = vmul.f32 %v1355_v31, %v981_v9 }
 0x6a9   : > { %v1010_v35 = vmul.f32 %v1009_v32, %v1008_v33 }
 0x6ab   : > { %v1012_v36 = vadd.f32 %v1011_v34, %v1010_v35 }
 0x6ad   : > { %1013 = vst.msk [vmem:[%s537_s13] sm:$0xff] %vm563_vm0, %v1012_v36 }
 0x6ae   : > { %1563 = shalt.err (!%p1560_p10)
}
 0x6af   : > { %1249 = dma.vmem_to_hbm [thread:$0]  (%p1789_p4), %s1028_s19, 128, %s1030_s20, %s1015_s18  }
 0x6b0 PF: > { %s2014_s29 = sld [smem:[#allocation23_spill]]  ;;  %s1041_s15 = sand.u32 1, %s1606_s25  }
 0x6b1   : > { %s1042_s14 = scalar_lea.sflag [#allocation6], %s1041_s15 }
 0x6b6   : > { %p2015_p11 = scmp.ge.s32.totalorder %s2014_s29, 2 }
 0x6b8   : > { %p1272_p5 = pnand %p2015_p11, %p1793_p6 }
 0x6ba   : > { %p1273_p13 = pneg %p1272_p5 }
 0x6bc   : > { %1601 = dma.done.wait (%p1273_p13), %s1042_s14, 128  }
 0x6bd   : > { %1603 = vsyncadd (%p1273_p13), %s1042_s14, 4294967168  ;;  %s2016_s28 = sld [smem:[#allocation24_spill]]  ;;  %s2019_s25 = smov %s1610_s26 }
 0x6be   : > { %s2017_s6 = sld [smem:[#allocation22_spill]] }
 0x6bf   : > { %s2018_s27 = sld [smem:[#allocation25_spill]] }
 0x6c3   : > { %p32_p0 = scmp.ge.s32.totalorder %s2016_s28, 4  }
 0x6c4   : > { %s2020_s26 = smov %s2017_s6 }
 0x6c5   :  { %34 = sbr.rel (!%p32_p0) target bundleno = 16 (0x10), region = 142 }
 0x6ca   :  { %1048 = vsyncpa [#allocation5], 1 }
 0x6cb   :  { %1050 = vsyncpa [#allocation5 + $0x1], 1 }
 0x6cc   :  { %1051 = vsyncpa [#allocation8], 1 }
 0x6cd   :  { %1053 = vsyncpa [#allocation8 + $0x1], 1 }
 0x6ce   :  { %1054 = vsyncpa [#allocation11], 1 }
 0x6cf   :  { %1055 = vsyncpa [#allocation14], 1 }
 0x6d0   :  { %1056 = vsyncpa [#allocation6], 1 }
 0x6d1   :  { %1058 = vsyncpa [#allocation6 + $0x1], 1 }

</bundles_post_ra>
